<compile_context>
chip_gen: v5e
topology: v5e:2x2
jax: 0.10.0
libtpu: 0.0.40
codegen_flags: <defaults>
</compile_context>

<pallas_src>
import numpy as np
import jax
import jax.numpy as jnp
from jax.experimental import pallas as pl
from jax.experimental.pallas import tpu as pltpu


def _round_up(x: int, m: int) -> int:
    return ((x + m - 1) // m) * m


def _parallel_linear_kernel(factors_ref, x_ref, w_ref, b_ref, o_ref, acc_ref):
    # factors_ref: SMEM (2,) f32 -> [weight_factor, bias_factor]
    # x_ref: (1, tm, tk), w_ref: (1, tk, tn), b_ref: (1, 1, tn)
    # o_ref: (1, tm, tn), acc_ref: (tm, tn) f32 scratch
    k = pl.program_id(3)

    @pl.when(k == 0)
    def _():
        acc_ref[...] = jnp.zeros_like(acc_ref)

    # MXU matmul, f32 accumulation across the K grid axis.
    acc_ref[...] += jnp.dot(x_ref[0], w_ref[0], preferred_element_type=jnp.float32)

    # Fused epilogue only on the last K step: scale, add bias, single cast, store.
    @pl.when(k == pl.num_programs(3) - 1)
    def _():
        wf = factors_ref[0]
        bf = factors_ref[1]
        o_ref[0] = (wf * acc_ref[...] + bf * b_ref[0]).astype(o_ref.dtype)


def parallel_linear(x, weight, bias, weight_factor, bias_factor,
                    *, tm_target=256, tn_target=256, tk_target=512):
    """weight_factor * (x @ weight) + bias_factor * bias[:, None, :] on TPU."""
    n_models, batch, in_features = x.shape
    _, _, out_features = weight.shape

    # ---- tile sizes: sublane-aligned M, lane-dense N, K in 128 multiples ----
    Mp = _round_up(batch, 8)
    Np = _round_up(out_features, 128)
    Kp = _round_up(in_features, 128)
    tm = Mp if Mp <= tm_target else tm_target
    tn = Np if Np <= tn_target else tn_target
    tk = Kp if Kp <= tk_target else tk_target
    Mp = _round_up(Mp, tm)
    Np = _round_up(Np, tn)
    Kp = _round_up(Kp, tk)

    # ---- zero-pad (K zero-padding contributes nothing to the dot) ----
    xp = jnp.pad(x, ((0, 0), (0, Mp - batch), (0, Kp - in_features)))
    wp = jnp.pad(weight, ((0, 0), (0, Kp - in_features), (0, Np - out_features)))
    bp = jnp.pad(bias, ((0, 0), (0, Np - out_features))).reshape(n_models, 1, Np)

    factors = jnp.asarray([weight_factor, bias_factor], dtype=jnp.float32)

    grid = (n_models, Mp // tm, Np // tn, Kp // tk)

    itemsize = np.dtype(x.dtype).itemsize
    cost = pl.CostEstimate(
        flops=2 * n_models * Mp * Kp * Np,
        transcendentals=0,
        bytes_accessed=n_models * (Mp * Kp + Kp * Np + Np + Mp * Np) * itemsize,
    )

    # Double-buffered inputs + output, f32 accumulator, plus headroom; capped so
    # it also fits v7x's smaller VMEM.
    vmem_bytes = 2 * (tm * tk + tk * tn + tn + tm * tn) * 4 + tm * tn * 4 + (4 << 20)
    vmem_bytes = min(vmem_bytes, 32 << 20)

    out_padded = pl.pallas_call(
        _parallel_linear_kernel,
        out_shape=jax.ShapeDtypeStruct((n_models, Mp, Np), x.dtype),
        grid_spec=pltpu.PrefetchScalarGridSpec(
            num_scalar_prefetch=0,
            grid=grid,
            in_specs=[
                pl.BlockSpec(memory_space=pltpu.MemorySpace.SMEM),        # factors
                pl.BlockSpec((1, tm, tk), lambda m, i, j, k: (m, i, k)),  # x
                pl.BlockSpec((1, tk, tn), lambda m, i, j, k: (m, k, j)),  # weight
                pl.BlockSpec((1, 1, tn), lambda m, i, j, k: (m, 0, j)),   # bias
            ],
            out_specs=pl.BlockSpec((1, tm, tn), lambda m, i, j, k: (m, i, j)),
            scratch_shapes=[pltpu.VMEM((tm, tn), jnp.float32)],
        ),
        compiler_params=pltpu.CompilerParams(
            dimension_semantics=("parallel", "parallel", "parallel", "arbitrary"),
            vmem_limit_bytes=int(vmem_bytes),
        ),
        cost_estimate=cost,
    )(factors, xp, wp, bp)

    # Slice off the M/N padding.
    return out_padded[:, :batch, :out_features]


if __name__ == "__main__":
    # Module config (matches ParallelLinearLayer.__init__ defaults):
    n_models = 4
    in_features = 32
    out_features = 16
    batch = 8
    weight_gain = 0.25
    weight_init_gain = 1.0    # weight_init_mode='normal'
    bias_gain = 0.1           # bias_init_mode='zero'

    weight_factor = weight_gain / np.sqrt(in_features)
    bias_factor = bias_gain

    key = jax.random.PRNGKey(0)
    kx, kw = jax.random.split(key)

    # Deterministic parameter init mirroring __init__: weight ~ N(0,1)*gain, bias = 0.
    weight = (jax.random.normal(kw, (n_models, in_features, out_features), dtype=jnp.float32)
              * weight_init_gain)
    bias = jnp.zeros((n_models, out_features), dtype=jnp.float32)

    # Example input: one batch of activations per parallel model.
    x = jax.random.normal(kx, (n_models, batch, in_features), dtype=jnp.float32)

    out = parallel_linear(x, weight, bias, weight_factor, bias_factor)
    out = jax.block_until_ready(out)

    # Reference check (plain JAX), same semantics as the PyTorch forward.
    ref = weight_factor * jnp.einsum("mbi,mio->mbo", x, weight) + bias_factor * bias[:, None, :]
    np.testing.assert_allclose(np.asarray(out), np.asarray(ref), rtol=1e-5, atol=1e-5)

    print("KERNEL_OK")
</pallas_src>

<mosaic_0001>
module attributes {stable_mosaic.version = 11 : i64} {
  func.func @_parallel_linear_kernel(%arg0: i32, %arg1: i32, %arg2: i32, %arg3: i32, %arg4: memref<2xf32, #tpu.memory_space<smem>>, %arg5: memref<1x8x128xf32, #tpu.memory_space<vmem>>, %arg6: memref<1x128x128xf32, #tpu.memory_space<vmem>>, %arg7: memref<1x1x128xf32, #tpu.memory_space<vmem>>, %arg8: memref<1x8x128xf32, #tpu.memory_space<vmem>>, %arg9: memref<8x128xf32, #tpu.memory_space<vmem>>) attributes {dimension_semantics = [#tpu.dimension_semantics<parallel>, #tpu.dimension_semantics<parallel>, #tpu.dimension_semantics<parallel>, #tpu.dimension_semantics<arbitrary>], iteration_bounds = array<i64: 4, 1, 1, 1>, scalar_prefetch = 0 : i64, scratch_operands = 1 : i64, tpu.core_type = #tpu.core_type<tc>, window_params = [{transform_indices = @transform_0, window_bounds = array<i64: 2>}, {transform_indices = @transform_1, window_bounds = array<i64: 1, 8, 128>}, {transform_indices = @transform_2, window_bounds = array<i64: 1, 128, 128>}, {transform_indices = @transform_3, window_bounds = array<i64: 1, 1, 128>}, {transform_indices = @transform_4, window_bounds = array<i64: 1, 8, 128>}]} {
    %c0_i32 = arith.constant 0 : i32
    %0 = arith.cmpi eq, %arg3, %c0_i32 : i32
    %1 = arith.extui %0 : i1 to i32
    %c0_i32_0 = arith.constant 0 : i32
    %2 = arith.cmpi ne, %1, %c0_i32_0 : i32
    scf.if %2 {
      %cst_12 = arith.constant 0.000000e+00 : f32
      %14 = vector.broadcast %cst_12 : f32 to vector<8x128xf32>
      %c0_13 = arith.constant 0 : index
      %c0_14 = arith.constant 0 : index
      %15 = vector.load %arg9[%c0_13, %c0_14] : memref<8x128xf32, #tpu.memory_space<vmem>>, vector<8x128xf32>
      tpu.vector_store %arg9[%c0_13, %c0_14], %14 {strides = array<i32>} : memref<8x128xf32, #tpu.memory_space<vmem>>, vector<8x128xf32>,
    } else {
    }
    %c0 = arith.constant 0 : index
    %c0_1 = arith.constant 0 : index
    %3 = vector.load %arg9[%c0, %c0_1] : memref<8x128xf32, #tpu.memory_space<vmem>>, vector<8x128xf32>
    %c0_2 = arith.constant 0 : index
    %c0_3 = arith.constant 0 : index
    %c0_4 = arith.constant 0 : index
    %4 = vector.load %arg5[%c0_2, %c0_3, %c0_4] : memref<1x8x128xf32, #tpu.memory_space<vmem>>, vector<1x8x128xf32>
    %5 = vector.shape_cast %4 : vector<1x8x128xf32> to vector<8x128xf32>
    %c0_5 = arith.constant 0 : index
    %c0_6 = arith.constant 0 : index
    %c0_7 = arith.constant 0 : index
    %6 = vector.load %arg6[%c0_5, %c0_6, %c0_7] : memref<1x128x128xf32, #tpu.memory_space<vmem>>, vector<1x128x128xf32>
    %7 = vector.shape_cast %6 : vector<1x128x128xf32> to vector<128x128xf32>
    %cst = arith.constant dense<0.000000e+00> : vector<8x128xf32>
    %8 = tpu.matmul %5, %7, %cst {dimension_numbers = #tpu.dot_dimension_numbers<[1], [0], [0], [1], [0, 0, 1, 1], [], []>} : vector<8x128xf32>, vector<128x128xf32>, vector<8x128xf32> -> vector<8x128xf32>
    %9 = arith.addf %3, %8 : vector<8x128xf32>
    %c0_8 = arith.constant 0 : index
    %c0_9 = arith.constant 0 : index
    %10 = vector.load %arg9[%c0_8, %c0_9] : memref<8x128xf32, #tpu.memory_space<vmem>>, vector<8x128xf32>
    tpu.vector_store %arg9[%c0_8, %c0_9], %9 {strides = array<i32>} : memref<8x128xf32, #tpu.memory_space<vmem>>, vector<8x128xf32>,
    %c0_i32_10 = arith.constant 0 : i32
    %11 = arith.cmpi eq, %arg3, %c0_i32_10 : i32
    %12 = arith.extui %11 : i1 to i32
    %c0_i32_11 = arith.constant 0 : i32
    %13 = arith.cmpi ne, %12, %c0_i32_11 : i32
    scf.if %13 {
      %c0_12 = arith.constant 0 : index
      %14 = memref.load %arg4[%c0_12] : memref<2xf32, #tpu.memory_space<smem>>
      %c1 = arith.constant 1 : index
      %15 = memref.load %arg4[%c1] : memref<2xf32, #tpu.memory_space<smem>>
      %c0_13 = arith.constant 0 : index
      %c0_14 = arith.constant 0 : index
      %16 = vector.load %arg9[%c0_13, %c0_14] : memref<8x128xf32, #tpu.memory_space<vmem>>, vector<8x128xf32>
      %17 = vector.broadcast %14 : f32 to vector<8x128xf32>
      %18 = arith.mulf %17, %16 : vector<8x128xf32>
      %c0_15 = arith.constant 0 : index
      %c0_16 = arith.constant 0 : index
      %c0_17 = arith.constant 0 : index
      %19 = vector.load %arg7[%c0_15, %c0_16, %c0_17] : memref<1x1x128xf32, #tpu.memory_space<vmem>>, vector<1x1x128xf32>
      %20 = vector.shape_cast %19 : vector<1x1x128xf32> to vector<1x128xf32>
      %21 = vector.broadcast %15 : f32 to vector<1x128xf32>
      %22 = arith.mulf %21, %20 : vector<1x128xf32>
      %23 = vector.broadcast %22 : vector<1x128xf32> to vector<8x128xf32>
      %24 = arith.addf %18, %23 : vector<8x128xf32>
      %c0_18 = arith.constant 0 : index
      %c0_19 = arith.constant 0 : index
      %c0_20 = arith.constant 0 : index
      %25 = vector.load %arg8[%c0_18, %c0_19, %c0_20] : memref<1x8x128xf32, #tpu.memory_space<vmem>>, vector<1x8x128xf32>
      %26 = vector.shape_cast %25 : vector<1x8x128xf32> to vector<8x128xf32>
      %27 = vector.shape_cast %24 : vector<8x128xf32> to vector<1x8x128xf32>
      tpu.vector_store %arg8[%c0_18, %c0_19, %c0_20], %27 {strides = array<i32>} : memref<1x8x128xf32, #tpu.memory_space<vmem>>, vector<1x8x128xf32>,
    } else {
    }
    return
  }
  func.func @transform_0(%arg0: i32, %arg1: i32, %arg2: i32, %arg3: i32) -> i32 {
    %c0_i32 = arith.constant 0 : i32
    %c0_i32_0 = arith.constant 0 : i32
    return %c0_i32 : i32
  }
  func.func @transform_1(%arg0: i32, %arg1: i32, %arg2: i32, %arg3: i32) -> (i32, i32, i32) {
    %c0_i32 = arith.constant 0 : i32
    return %arg0, %arg1, %arg3 : i32, i32, i32
  }
  func.func @transform_2(%arg0: i32, %arg1: i32, %arg2: i32, %arg3: i32) -> (i32, i32, i32) {
    %c0_i32 = arith.constant 0 : i32
    return %arg0, %arg3, %arg2 : i32, i32, i32
  }
  func.func @transform_3(%arg0: i32, %arg1: i32, %arg2: i32, %arg3: i32) -> (i32, i32, i32) {
    %c0_i32 = arith.constant 0 : i32
    %c0_i32_0 = arith.constant 0 : i32
    return %arg0, %c0_i32, %arg2 : i32, i32, i32
  }
  func.func @transform_4(%arg0: i32, %arg1: i32, %arg2: i32, %arg3: i32) -> (i32, i32, i32) {
    %c0_i32 = arith.constant 0 : i32
    return %arg0, %arg1, %arg2 : i32, i32, i32
  }
}

</mosaic_0001>

<bundles_post_ra>
// kernel: tpu_custom_call.1
= control target key start
LH: loop header
LB: loop body
LE: loop exit
PB: predicated region body
PF: predicated region fallthrough
CT: control target
= control target key end

     0   :  { %s1108_s0 = inlined_call_operand.hbm [shape: f32[2], index: 0, kind: input, shape index: {}]   ;;  %s1109_s1 = inlined_call_operand.hbm [shape: f32[4,8,128], index: 1, kind: input, shape index: {}]   ;;  %s1110_s2 = inlined_call_operand.hbm [shape: f32[4,128,128], index: 2, kind: input, shape index: {}]   ;;  %s1111_s3 = inlined_call_operand.hbm [shape: f32[4,1,128], index: 3, kind: input, shape index: {}]   ;;  %s1112_s4 = inlined_call_operand.hbm [shape: f32[4,8,128], index: 4, kind: output, shape index: {}]  }
   0x1   :  { %1116 = sst [smem:[#allocation20_spill]] %s1108_s0 }
   0x2   :  { %1117 = sst [smem:[#allocation21_spill]] %s1110_s2 }
   0x3   :  { %9 = vsyncpa [#allocation6], 0 }
   0x4   :  { %10 = vsyncpa [#allocation4], 0 }
   0x5   :  { %12 = vsyncpa [#allocation4 + $0x1], 0 }
   0x6   :  { %13 = vsyncpa [#allocation9], 0 }
   0x7   :  { %15 = vsyncpa [#allocation9 + $0x1], 0 }
   0x8   :  { %16 = vsyncpa [#allocation5], 0 }
   0x9   :  { %18 = vsyncpa [#allocation5 + $0x1], 0  ;;  %s904_s15 = smov 0   ;;  %s906_s16 = smov 0  }
   0xa   :  { %s908_s17 = smov 0   ;;  %s910_s18 = smov 0  }
   0xb   :  { %s912_s19 = smov 0   ;;  %s914_s20 = smov 0  }
   0xc LB: > { %1118 = sst [smem:[#allocation16_spill]] %s862_s17  ;;  %s50_s21 = sadd.s32 1, %s870_s19  ;;  %s874_s20 = sphi %s914_s20, %s24_s20   ;;  %s870_s19 = sphi %s912_s19, %s1136_s19   ;;  %s866_s18 = sphi %s910_s18, %s1135_s18   ;;  %s862_s17 = sphi %s908_s17, %s1131_s17   ;;  %s858_s16 = sphi %s906_s16, %s1134_s16   ;;  %s854_s15 = sphi %s904_s15, %s1133_s15  }
   0xd   : > { %s82_s22 = sadd.s32 1, %s862_s17  ;;  %p52_p0 = scmp.ge.s32.totalorder %s50_s21, 4 }
   0xe   : > { %p89_p1 = scmp.ne.s32.totalorder %s862_s17, %s858_s16  ;;  %p90_p2 = scmp.eq.s32.totalorder %s874_s20, 0 }
   0xf   : > { %s1138_s21 = smov (%p52_p0, %s50_s21), 0  ;;  %p625_p4 = scmp.lt.s32.totalorder %s874_s20, 4 }
  0x10   : > { %1119 = sst [smem:[#allocation17_spill]] %s1138_s21  ;;  %p91_p3 = por %p90_p2, %p89_p1 }
  0x11   : > { %s75_s23 = ssub.s32 %s870_s19, %s1138_s21  ;;  %s948_s24 = sand.u32 1, %s862_s17  }
  0x12   : > { %p80_p5 = scmp.eq.s32.totalorder %s75_s23, 0  ;;  %p950_p6 = pnand %p625_p4, %p91_p3 }
  0x13   : > { %s238_s26 = sand.u32 1, %s874_s20   ;;  %s580_s27 = sshll.u32 %s948_s24, 7 }
  0x14   : > { %s957_s28 = scalar_select %p80_p5, %s862_s17, %s82_s22  }
  0x15   : > { %s593_s29 = sshll.u32 %s870_s19, 7  ;;  %s1122_s2 = sld [smem:[#allocation21_spill]] }
  0x16   : > { %1121 = sst [smem:[#allocation18_spill]] %s957_s28  ;;  %s242_s7 = scalar_lea.vmem [#allocation8], %s580_s27 }
  0x17   : > { %s253_s8 = sshll.u32 %s242_s7, 4  ;;  %s963_s10 = scalar_lea.sflag [#allocation9], %s238_s26  ;;  %s254_s8 = int_to_ptr.vmem [resolvable:$true] %s253_s8 }
  0x18   : > { %s876_s11 = smov 128   ;;  %s877_s12 = smov 8  }
  0x19   : > { %s969_s13 = sadd.s32 4294967295, %s874_s20   ;;  %s574_s14 = sadd.s32 4294967294, %s874_s20  }
  0x1a   : > { %p95_p7 = scmp.ne.s32.totalorder %s858_s16, %s854_s15  ;;  %p96_p8 = scmp.eq.s32.totalorder %s969_s13, 0 }
  0x1b   : > { %s250_s6 = scalar_lea.hbm %s1122_s2, %s593_s29  ;;  %p181_p9 = scmp.eq.s32.totalorder %s969_s13, 3 }
  0x1c   : > { %s251_s9 = sshll.u32 %s250_s6, 4  ;;  %p187_p10 = scmp.eq.s32.totalorder %s574_s14, 3  ;;  %s252_s9 = int_to_ptr.hbm [resolvable:$true] %s251_s9 }
  0x1d   : > { %616 = dma.hbm_to_vmem [thread:$0]  (!%p950_p6), %s252_s9, 2048, %s254_s8, %s963_s10, %s876_s11, %s876_s11, %s877_s12  }
  0x1e   : > { %p575_p11 = scmp.ge.s32.totalorder %s874_s20, 1  ;;  %p979_p12 = por %p96_p8, %p95_p7 }
  0x1f   : > { %p986_p13 = por %p181_p9, %p89_p1  ;;  %p990_p0 = por %p187_p10, %p95_p7 }
  0x20   : > { %p194_p2 = scmp.lt.s32.totalorder %s874_s20, 5  ;;  %s1127_s0 = sld [smem:[#allocation20_spill]] }
  0x21   : > { %s1125_s26 = scalar_select %p990_p0, 1, 0 }
  0x22   : > { %p998_p3 = pnand %p575_p11, %p194_p2  ;;  %s578_s6 = sshll.u32 %s948_s24, 3 }
  0x23   : > { %1126 = sst [smem:[#allocation19_spill]] %s1125_s26  ;;  %s579_s7 = sshll.u32 %s870_s19, 3 }
  0x24   : > { %p606_p1 = pneg %p998_p3  ;;  %s227_s11 = scalar_lea.hbm %s1109_s1, %s579_s7 }
  0x25   : > { %s229_s12 = sshll.u32 %s227_s11, 4  ;;  %s221_s14 = scalar_lea.vmem [#allocation7], %s578_s6  ;;  %s230_s12 = int_to_ptr.hbm [resolvable:$true] %s229_s12 }
  0x26   : > { %s206_s30 = sshll.u32 %s1127_s0, 4  ;;  %p607_p4 = pnand %p606_p1, %p96_p8  ;;  %s207_s30 = int_to_ptr.hbm [resolvable:$true] %s206_s30 }
  0x27   : > { %s231_s27 = sshll.u32 %s221_s14, 4  ;;  %s878_s29 = smov [#allocation3]   ;;  %s232_s27 = int_to_ptr.vmem [resolvable:$true] %s231_s27 }
  0x28   : > { %609 = dma.hbm_to_smem (!%p607_p4), %s207_s30, 16, %s878_s29, [#allocation6]  }
  0x29   : > { %s218_s0 = scalar_lea.sflag [#allocation4], %s948_s24  ;;  %s270_s28 = scalar_lea.hbm %s1111_s3, %s870_s19 }
  0x2a   : > { %613 = dma.hbm_to_vmem [thread:$0]  (!%p950_p6), %s230_s12, 128, %s232_s27, %s218_s0  }
  0x2b   : > { %s266_s17 = scalar_lea.vmem [#allocation10], %s948_s24  ;;  %s272_s8 = sshll.u32 %s270_s28, 4  ;;  %s273_s8 = int_to_ptr.hbm [resolvable:$true] %s272_s8 }
  0x2c   : > { %s274_s26 = sshll.u32 %s266_s17, 4  ;;  %283 = sbr.rel (%p998_p3) target bundleno = 224 (0xe0), region = 36  ;;  %s275_s26 = int_to_ptr.vmem [resolvable:$true] %s274_s26 }
  0x2d   : > { %619 = dma.hbm_to_vmem [thread:$0]  (!%p950_p6), %s273_s8, 16, %s275_s26, %s963_s10  }
  0x31   : > { %837 = dma.done.wait (%p96_p8), [#allocation6], 16  }
  0x32   : > { %839 = vsyncadd (%p96_p8), [#allocation6], 4294967280  ;;  %s1029_s0 = sand.u32 1, %s858_s16  }
  0x33   : > { %s585_s2 = sshll.u32 %s1029_s0, 3  ;;  %s291_s17 = scalar_lea.sflag [#allocation4], %s1029_s0 }
  0x34   : > { %s1035_s21 = scalar_lea.vmem [#allocation7], %s585_s2 }
  0x35   : > { %841 = dma.done.wait (%p979_p12), %s291_s17, 128  }
  0x36   : > { %843 = vsyncadd (%p979_p12), %s291_s17, 4294967168  ;;  %s300_s24 = sand.u32 1, %s969_s13   ;;  %s586_s25 = sshll.u32 %s1029_s0, 7 }
  0x37   : > { %s301_s28 = scalar_lea.sflag [#allocation9], %s300_s24  ;;  %s1043_s10 = scalar_lea.vmem [#allocation8], %s586_s25 }
  0x38   : > { %845 = dma.done.wait (%p979_p12), %s301_s28, 2064  }
  0x39   : > { %847 = vsyncadd (%p979_p12), %s301_s28, 4294965232  ;;  %s313_s26 = scalar_lea.vmem [#allocation10], %s1029_s0 }
  0x3a   : > { %319 = sfence }
  0x3b   : > { %v372_v0 = vld [vmem:[%s1043_s10 + $0x78] sm:$0xff]  ;;  %v371_v1 = vld [vmem:[%s1043_s10 + $0x70] sm:$0xff]  ;;  %v370_v2 = vld [vmem:[%s1043_s10 + $0x68] sm:$0xff]  ;;  %s588_s13 = sld [smem:[#allocation3 + $0x1]]  ;;  %s590_s30 = sshll.u32 %s866_s18, 3 }
  0x3c   : > { %373 = vmatpush.msra.mxu0 %v372_v0  ;;  %v369_v3 = vld [vmem:[%s1043_s10 + $0x60] sm:$0xff]  ;;  %v368_v4 = vld [vmem:[%s1043_s10 + $0x58] sm:$0xff]  ;;  %v367_v5 = vld [vmem:[%s1043_s10 + $0x50] sm:$0xff]  ;;  %s398_s22 = sld [smem:[#allocation3]]  ;;  %s424_s7 = scalar_lea.hbm %s1112_s4, %s590_s30 }
  0x3d   : > { %v366_v6 = vld [vmem:[%s1043_s10 + $0x48] sm:$0xff]  ;;  %v365_v7 = vld [vmem:[%s1043_s10 + $0x40] sm:$0xff]  ;;  %v364_v8 = vld [vmem:[%s1043_s10 + $0x38] sm:$0xff]  ;;  %s348_s9 = scalar_lea.vmem [#allocation11], %s585_s2  ;;  %s428_s12 = sshll.u32 %s424_s7, 4  ;;  %s429_s12 = int_to_ptr.hbm [resolvable:$true] %s428_s12 }
  0x3e   : > { %374 = vmatpush.msra.mxu0 %v371_v1  ;;  %v363_v9 = vld [vmem:[%s1043_s10 + $0x30] sm:$0xff]  ;;  %v362_v10 = vld [vmem:[%s1043_s10 + $0x28] sm:$0xff]  ;;  %v361_v11 = vld [vmem:[%s1043_s10 + $0x20] sm:$0xff]  ;;  %s426_s11 = sshll.u32 %s348_s9, 4  ;;  %s412_s14 = scalar_lea.sflag [#allocation5], %s1029_s0  ;;  %s427_s11 = int_to_ptr.vmem [resolvable:$true] %s426_s11 }
  0x3f   : > { %v360_v12 = vld [vmem:[%s1043_s10 + $0x18] sm:$0xff]  ;;  %v359_v13 = vld [vmem:[%s1043_s10 + $0x10] sm:$0xff]  ;;  %v358_v14 = vld [vmem:[%s1043_s10 + $0x8] sm:$0xff]  ;;  %s798_s18 = sshra.s32 %s429_s12, 4  ;;  %s804_s17 = scalar_lea.hbm %s1112_s4, 32  ;;  %s799_s18 = int_to_ptr.hbm [resolvable:$true] %s798_s18 }
  0x40   : > { %375 = vmatpush.msra.mxu0 %v370_v2  ;;  %v357_v15 = vld [vmem:[%s1043_s10] sm:$0xff]  ;;  %v356_v16 = vld [vmem:[%s1035_s21] sm:$0xff]  ;;  %s800_s27 = scalar_lea.hbm %s799_s18, 8  ;;  %p805_p8 = scmp.lt.s32.totalorder %s799_s18, %s1112_s4 }
  0x41   : > { %v403_v17 = vld [vmem:[%s313_s26] sm:$0x1]  ;;  %v404_v18 = vstv %s588_s13  ;;  %p801_p5 = scmp.ne.s32.totalorder %s799_s18, %s800_s27  ;;  %p806_p9 = scmp.lt.s32.totalorder %s804_s17, %s800_s27 }
  0x42   : > { %376 = vmatpush.msra.mxu0 %v369_v3  ;;  %v405_v19 = vmul.f32 %v404_v18, %v403_v17  ;;  %v401_v20 = vstv %s398_s22 }
  0x43   : > { %p802_p6 = pnand %p801_p5, %p986_p13  ;;  %p807_p10 = por %p806_p9, %p805_p8 }
  0x44   : > { %377 = vmatpush.msra.mxu0 %v368_v4  ;;  %v407_v21 = vperm.slane %v405_v19, 0 }
  0x45   : > { %p803_p7 = pneg %p802_p6 }
  0x46   : > { %378 = vmatpush.msra.mxu0 %v367_v5 }
  0x47   : > { %p808_p11 = pnand %p807_p10, %p803_p7 }
  0x48   : > { %379 = vmatpush.msra.mxu0 %v366_v6 }
  0x4a   : > { %380 = vmatpush.msra.mxu0 %v365_v7 }
  0x4c   : > { %381 = vmatpush.msra.mxu0 %v364_v8 }
  0x4e   : > { %382 = vmatpush.msra.mxu0 %v363_v9 }
  0x50   : > { %383 = vmatpush.msra.mxu0 %v362_v10 }
  0x52   : > { %384 = vmatpush.msra.mxu0 %v361_v11 }
  0x54   : > { %385 = vmatpush.msra.mxu0 %v360_v12 }
  0x56   : > { %386 = vmatpush.msra.mxu0 %v359_v13 }
  0x58   : > { %387 = vmatpush.msra.mxu0 %v358_v14 }
  0x5a   : > { %388 = vmatpush.msra.mxu0 %v357_v15 }
  0x5b   : > { %389 = vmatmul.f32.vlgmr.msra.gmra.mxu0 %v356_v16 }
  0xd8   : > { %v390_v22 = vpop.f32.mrf.mxu0 }
  0xd9   : > { %v402_v23 = vmul.f32 %v401_v20, %v390_v22 }
  0xdb   : > { %v409_v24 = vadd.f32 %v407_v21, %v402_v23 }
  0xdd   : > { %410 = vst [vmem:[%s348_s9] sm:$0xff] %v409_v24 }
  0xde   : > { %811 = shalt.err (!%p808_p11)
}
  0xdf   : > { %604 = dma.vmem_to_hbm [thread:$0]  (%p986_p13), %s427_s11, 128, %s429_s12, %s412_s14  }
  0xe0 PF: > { %p627_p12 = scmp.ge.s32.totalorder %s874_s20, 2  ;;  %s440_s24 = sand.u32 1, %s854_s15  }
  0xe1   : > { %s441_s25 = scalar_lea.sflag [#allocation5], %s440_s24 }
  0xe2   : > { %p621_p2 = pnand %p627_p12, %p990_p0 }
  0xe4   : > { %p622_p3 = pneg %p621_p2 }
  0xe6   : > { %849 = dma.done.wait (%p622_p3), %s441_s25, 128  }
  0xe7   : > { %851 = vsyncadd (%p622_p3), %s441_s25, 4294967168  ;;  %s24_s20 = sadd.s32 1, %s874_s20   ;;  %s1130_s28 = sld [smem:[#allocation16_spill]] }
  0xe8   : > { %p21_p1 = scmp.ge.s32.totalorder %s24_s20, 6   ;;  %s1131_s17 = sld [smem:[#allocation18_spill]] }
  0xe9   : > { %s1132_s23 = sld [smem:[#allocation17_spill]]  ;;  %s1133_s15 = smov %s858_s16 }
  0xea   : > { %s1135_s18 = smov %s870_s19 }
  0xeb   :  { %23 = sbr.rel (!%p21_p1) target bundleno = 12 (0xc), region = 118 }
  0xed   : > { %s1134_s16 = smov %s1130_s28 }
  0xef   : > { %s1136_s19 = smov %s1132_s23 }
  0xf0   :  { %447 = vsyncpa [#allocation4], 1 }
  0xf1   :  { %449 = vsyncpa [#allocation4 + $0x1], 1 }
  0xf2   :  { %450 = vsyncpa [#allocation9], 1 }
  0xf3   :  { %452 = vsyncpa [#allocation9 + $0x1], 1 }
  0xf4   :  { %453 = vsyncpa [#allocation5], 1 }
  0xf5   :  { %455 = vsyncpa [#allocation5 + $0x1], 1 }
  0xf6   :  { %456 = vsyncpa [#allocation6], 1 }
  0xf7   :  { %458 = vsyncpa [#allocation6 + $0x1], 1 }

</bundles_post_ra>
